<compile_context>
chip_gen: v5e
topology: v5e:2x2
jax: 0.10.0
libtpu: 0.0.40
codegen_flags: <defaults>
</compile_context>

<pallas_src>
import jax
import jax.numpy as jnp
from jax.experimental import pallas as pl
from jax.experimental.pallas import tpu as pltpu


def _round_up(x, m):
    return ((x + m - 1) // m) * m


# ---------------------------------------------------------------------------
# Fast path: the whole problem fits a single VMEM block (this is the actual
# Linear(5, 2), B=2 workload).  No grid, no scratch, no padding ops.
# ---------------------------------------------------------------------------
def _single_block_kernel(x1_ref, wt_ref, b_ref, x2_ref, v3_ref, v2_ref):
    v2 = jnp.dot(x1_ref[...], wt_ref[...], preferred_element_type=jnp.float32)
    v2 = v2 + b_ref[...].astype(jnp.float32)            # (1, OUT) broadcast
    v3_ref[...] = (v2 + x2_ref[...].astype(jnp.float32)).astype(v3_ref.dtype)
    v2_ref[...] = v2.astype(v2_ref.dtype)


def _single_block_forward(x1, x2, weight, bias):
    B, IN = x1.shape
    OUT = weight.shape[0]
    dtype = x1.dtype

    wt = weight.T                 # (IN, OUT): plain contraction on the MXU
    b2 = bias.reshape(1, OUT)     # 2-D for friendly VMEM layout

    out_shape = (
        jax.ShapeDtypeStruct((B, OUT), dtype),   # v3
        jax.ShapeDtypeStruct((B, OUT), dtype),   # v2
    )
    # No grid / specs: whole arrays land in VMEM as single blocks.
    return pl.pallas_call(
        _single_block_kernel,
        out_shape=out_shape,
    )(x1, wt, b2, x2)


# ---------------------------------------------------------------------------
# General path: tiled (M, N, K) matmul with f32 accumulator for large shapes.
# ---------------------------------------------------------------------------
def _tiled_kernel(x1_ref, wt_ref, b_ref, x2_ref, v3_ref, v2_ref, acc_ref):
    # grid = (M/tm, N/tn, K/tk); K is the innermost (reduction) axis.
    k = pl.program_id(2)
    partial = jnp.dot(x1_ref[...], wt_ref[...],
                      preferred_element_type=jnp.float32)

    @pl.when(k == 0)
    def _():
        acc_ref[...] = partial          # first iteration assigns (no zero-fill)

    @pl.when(k > 0)
    def _():
        acc_ref[...] += partial

    @pl.when(k == pl.num_programs(2) - 1)
    def _():
        v2 = acc_ref[...] + b_ref[...].astype(jnp.float32)   # epilogue in f32
        v2_ref[...] = v2.astype(v2_ref.dtype)
        v3_ref[...] = (v2 + x2_ref[...].astype(jnp.float32)).astype(v3_ref.dtype)


def _tiled_forward(x1, x2, weight, bias):
    B, IN = x1.shape
    OUT = weight.shape[0]
    dtype = x1.dtype

    # Tile selection: lane-dense N (multiple of 128), big M tiles (cap 512),
    # and >=2 blocks along M when B allows so v7x's 2nd TensorCore has work.
    tn = min(_round_up(OUT, 128), 256)
    tk = min(_round_up(IN, 128), 512)
    tm = min(_round_up(B, 8), 512)
    Mp = _round_up(B, tm)
    if B >= 16 and Mp // tm < 2:
        tm = min(_round_up((B + 1) // 2, 8), 512)
        Mp = _round_up(B, tm)
    Np = _round_up(OUT, tn)
    Kp = _round_up(IN, tk)

    # Only materialize padding for dims that are actually ragged.
    def _pad2(a, r, c):
        if a.shape == (r, c):
            return a
        return jnp.zeros((r, c), a.dtype).at[:a.shape[0], :a.shape[1]].set(a)

    x1_p = _pad2(x1, Mp, Kp)
    wt_p = _pad2(weight.T, Kp, Np)
    b_p = _pad2(bias.reshape(1, OUT), 1, Np)
    x2_p = _pad2(x2, Mp, Np)

    grid = (Mp // tm, Np // tn, Kp // tk)

    # VMEM budget from the actual double-buffered tile footprint (+ headroom),
    # clamped to v7x's 64 MiB physical VMEM.
    elt = jnp.dtype(dtype).itemsize
    tile_bytes = (2 * (tm * tk + tk * tn + tn + tm * tn) * elt   # inputs x2 bufs
                  + 2 * 2 * tm * tn * elt                         # outputs x2 bufs
                  + tm * tn * 4)                                  # f32 accumulator
    vmem_limit = int(min(64 * 1024 * 1024,
                         max(8 * 1024 * 1024, int(tile_bytes * 1.5))))

    out_shapes = (
        jax.ShapeDtypeStruct((Mp, Np), dtype),   # v3 (padded)
        jax.ShapeDtypeStruct((Mp, Np), dtype),   # v2 (padded)
    )

    # Padded x2 copy is dead after the call; reuse its HBM buffer for v3.
    io_aliases = {3: 0} if x2_p is not x2 else {}

    v3_p, v2_p = pl.pallas_call(
        _tiled_kernel,
        out_shape=out_shapes,
        grid_spec=pltpu.PrefetchScalarGridSpec(
            num_scalar_prefetch=0,
            grid=grid,
            in_specs=[
                pl.BlockSpec((tm, tk), lambda i, j, k: (i, k)),   # x1
                pl.BlockSpec((tk, tn), lambda i, j, k: (k, j)),   # W^T (K, N)
                pl.BlockSpec((1, tn), lambda i, j, k: (0, j)),    # bias
                pl.BlockSpec((tm, tn), lambda i, j, k: (i, j)),   # x2
            ],
            out_specs=(
                pl.BlockSpec((tm, tn), lambda i, j, k: (i, j)),   # v3
                pl.BlockSpec((tm, tn), lambda i, j, k: (i, j)),   # v2
            ),
            scratch_shapes=[pltpu.VMEM((tm, tn), jnp.float32)],
        ),
        compiler_params=pltpu.CompilerParams(
            dimension_semantics=("parallel", "parallel", "arbitrary"),
            vmem_limit_bytes=vmem_limit,
        ),
        input_output_aliases=io_aliases,
    )(x1_p, wt_p, b_p, x2_p)

    return v3_p[:B, :OUT], v2_p[:B, :OUT]


@jax.jit
def model_forward(x1, x2, weight, bias):
    B, IN = x1.shape
    OUT = weight.shape[0]
    elt = max(jnp.dtype(x1.dtype).itemsize, 4)
    total_bytes = (B * IN + IN * OUT + OUT + 3 * B * OUT) * elt
    # Single-block fast path when everything comfortably fits one VMEM tile.
    if B <= 512 and IN <= 2048 and OUT <= 2048 and total_bytes <= (4 << 20):
        return _single_block_forward(x1, x2, weight, bias)
    return _tiled_forward(x1, x2, weight, bias)


if __name__ == "__main__":
    key = jax.random.PRNGKey(0)
    k_x1, k_x2, k_w, k_b = jax.random.split(key, 4)

    B, IN, OUT = 2, 5, 2

    # Inputs (match torch.randn(2, 5) / torch.randn(2, 2))
    x1 = jax.random.normal(k_x1, (B, IN), dtype=jnp.float32)
    x2 = jax.random.normal(k_x2, (B, OUT), dtype=jnp.float32)

    # Deterministic Linear(5, 2) params, PyTorch-style uniform(-1/sqrt(in), 1/sqrt(in))
    bound = 1.0 / jnp.sqrt(jnp.float32(IN))
    weight = jax.random.uniform(k_w, (OUT, IN), dtype=jnp.float32,
                                minval=-bound, maxval=bound)
    bias = jax.random.uniform(k_b, (OUT,), dtype=jnp.float32,
                              minval=-bound, maxval=bound)

    v3, v2 = model_forward(x1, x2, weight, bias)
    jax.block_until_ready((v3, v2))

    # Reference check in plain JAX
    v2_ref = x1 @ weight.T + bias
    v3_ref = v2_ref + x2
    assert v2.shape == (B, OUT) and v3.shape == (B, OUT)
    assert jnp.allclose(v2, v2_ref, atol=1e-5), "v2 mismatch"
    assert jnp.allclose(v3, v3_ref, atol=1e-5), "v3 mismatch"

    print("KERNEL_OK")
</pallas_src>

<mosaic_0001>
module attributes {stable_mosaic.version = 11 : i64} {
  func.func @_single_block_kernel(%arg0: memref<2x5xf32, #tpu.memory_space<vmem>>, %arg1: memref<5x2xf32, #tpu.memory_space<vmem>>, %arg2: memref<1x2xf32, #tpu.memory_space<vmem>>, %arg3: memref<2x2xf32, #tpu.memory_space<vmem>>, %arg4: memref<2x2xf32, #tpu.memory_space<vmem>>, %arg5: memref<2x2xf32, #tpu.memory_space<vmem>>) attributes {dimension_semantics = [], scalar_prefetch = 0 : i64, scratch_operands = 0 : i64, tpu.core_type = #tpu.core_type<tc>} {
    %c0 = arith.constant 0 : index
    %c0_0 = arith.constant 0 : index
    %0 = vector.load %arg0[%c0, %c0_0] : memref<2x5xf32, #tpu.memory_space<vmem>>, vector<2x5xf32>
    %c0_1 = arith.constant 0 : index
    %c0_2 = arith.constant 0 : index
    %1 = vector.load %arg1[%c0_1, %c0_2] : memref<5x2xf32, #tpu.memory_space<vmem>>, vector<5x2xf32>
    %cst = arith.constant dense<0.000000e+00> : vector<2x2xf32>
    %2 = tpu.matmul %0, %1, %cst {dimension_numbers = #tpu.dot_dimension_numbers<[1], [0], [0], [1], [0, 0, 1, 1], [], []>} : vector<2x5xf32>, vector<5x2xf32>, vector<2x2xf32> -> vector<2x2xf32>
    %c0_3 = arith.constant 0 : index
    %c0_4 = arith.constant 0 : index
    %3 = vector.load %arg2[%c0_3, %c0_4] : memref<1x2xf32, #tpu.memory_space<vmem>>, vector<1x2xf32>
    %4 = vector.broadcast %3 : vector<1x2xf32> to vector<2x2xf32>
    %5 = arith.addf %2, %4 : vector<2x2xf32>
    %c0_5 = arith.constant 0 : index
    %c0_6 = arith.constant 0 : index
    %6 = vector.load %arg3[%c0_5, %c0_6] : memref<2x2xf32, #tpu.memory_space<vmem>>, vector<2x2xf32>
    %7 = arith.addf %5, %6 : vector<2x2xf32>
    %c0_7 = arith.constant 0 : index
    %c0_8 = arith.constant 0 : index
    %8 = vector.load %arg4[%c0_7, %c0_8] : memref<2x2xf32, #tpu.memory_space<vmem>>, vector<2x2xf32>
    tpu.vector_store %arg4[%c0_7, %c0_8], %7 {strides = array<i32>} : memref<2x2xf32, #tpu.memory_space<vmem>>, vector<2x2xf32>,
    %c0_9 = arith.constant 0 : index
    %c0_10 = arith.constant 0 : index
    %9 = vector.load %arg5[%c0_9, %c0_10] : memref<2x2xf32, #tpu.memory_space<vmem>>, vector<2x2xf32>
    tpu.vector_store %arg5[%c0_9, %c0_10], %5 {strides = array<i32>} : memref<2x2xf32, #tpu.memory_space<vmem>>, vector<2x2xf32>,
    return
  }
}

</mosaic_0001>

<bundles_post_ra>
// kernel: model_forward.1
= control target key start
LH: loop header
LB: loop body
LE: loop exit
PB: predicated region body
PF: predicated region fallthrough
CT: control target
= control target key end

     0   :  { %11 = vsyncpa [#allocation3], 0  ;;  %vm31_vm0 = vcmask 1044480   ;;  %vm27_vm1 = vcmask 39936   ;;  %s199_s0 = inlined_call_operand.vmem [shape: f32[2,5], index: 0, kind: input, shape index: {}]   ;;  %s200_s1 = inlined_call_operand.vmem [shape: f32[5,2], index: 1, kind: input, shape index: {}]   ;;  %s201_s2 = inlined_call_operand.vmem [shape: f32[1,2], index: 2, kind: input, shape index: {}]   ;;  %s202_s3 = inlined_call_operand.vmem [shape: f32[2,2], index: 3, kind: input, shape index: {}]   ;;  %s203_s4 = inlined_call_operand.hbm [shape: f32[2,2], index: 4, kind: output, shape index: {0}]   ;;  %s204_s5 = inlined_call_operand.hbm [shape: f32[2,2], index: 5, kind: output, shape index: {1}]  }
   0x1   :  { %v22_v0 = vld [vmem:[%s200_s1] sm:$0x1f] }
   0x2   :  { %v21_v1 = vld [vmem:[%s199_s0] sm:$0x3]  ;;  %92 = vmatpush.msk.msra.mxu0 %vm31_vm0, %v22_v0 }
   0x3   :  { %12 = vsyncpa [#allocation5], 0  ;;  %93 = vmatmul.msk.f32.vlgmr.msra.gmra.mxu0 %vm27_vm1, %v21_v1  ;;  %v96_v2 = vld [vmem:[%s201_s2] ss:$0 sm:$0xff]  ;;  %s149_s24 = smov [#allocation4]   ;;  %s78_s28 = sshll.u32 %s204_s5, 4  ;;  %s79_s28 = int_to_ptr.hbm [resolvable:$true] %s78_s28 }
   0x4   :  { %s76_s25 = sshll.u32 %s149_s24, 4  ;;  %v55_v4 = vld [vmem:[%s202_s3] sm:$0x3]  ;;  %vm57_vm2 = vcmask 9216   ;;  %s150_s0 = smov [#allocation2]   ;;  %s77_s25 = int_to_ptr.vmem [resolvable:$true] %s76_s25 }
   0x5   :  { %s65_s30 = sshll.u32 %s150_s0, 4  ;;  %s67_s8 = sshll.u32 %s203_s4, 4  ;;  %s66_s30 = int_to_ptr.vmem [resolvable:$true] %s65_s30  ;;  %s68_s8 = int_to_ptr.hbm [resolvable:$true] %s67_s8 }
  0x80   :  { %v52_v3 = vpop.f32.mrf.mxu0 }
  0x81   :  { %v53_v5 = vadd.f32 %v96_v2, %v52_v3 }
  0x83   :  { %v56_v6 = vadd.f32 %v55_v4, %v53_v5  ;;  %59 = vst.msk [vmem:[#allocation4] sm:$0x3] %vm57_vm2, %v53_v5 }
  0x84   :  { %81 = dma.vmem_to_hbm [thread:$0]  %s77_s25, 32, %s79_s28, [#allocation5]  }
  0x85   :  { %58 = vst.msk [vmem:[#allocation2] sm:$0x3] %vm57_vm2, %v56_v6 }
  0x86   :  { %70 = dma.vmem_to_hbm [thread:$0]  %s66_s30, 32, %s68_s8, [#allocation3]  }
  0x87   :  { %145 = dma.done.wait [#allocation3], 32  }
  0x88   :  { %146 = vsyncadd [#allocation3], 4294967264 }
  0x89   :  { %147 = dma.done.wait [#allocation5], 32  }
  0x8a   :  { %148 = vsyncadd [#allocation5], 4294967264 }
  0x8b   :  { %90 = vsyncpa [#allocation3], 1 }
  0x8c   :  { %91 = vsyncpa [#allocation5], 1 }

</bundles_post_ra>
